<compile_context>
chip_gen: v5e
topology: v5e:2x2
jax: 0.10.0
libtpu: 0.0.40
codegen_flags: <defaults>
</compile_context>

<pallas_src>
import math
import functools

import jax
import jax.numpy as jnp
from jax.experimental import pallas as pl
from jax.experimental.pallas import tpu as pltpu

_LN_EPS = 1e-5
_VMEM_LIMIT = 32 * 1024 * 1024


# ---------------- helpers ----------------

def _layernorm_f32(y, g, b, eps):
    mu = jnp.mean(y, axis=-1, keepdims=True)
    var = jnp.mean((y - mu) ** 2, axis=-1, keepdims=True)
    return (y - mu) * jax.lax.rsqrt(var + eps) * g + b


# ---------------- one-time parameter preparation (hoisted packing / casting) ----------------

def _prep_attn(p, num_heads):
    D = p["wq"].shape[0]
    H = num_heads
    Dh = D // H
    scale = 1.0 / math.sqrt(Dh)

    def head_major_in(w):  # [D, D] -> [H, D, Dh]  (column blocks -> leading head axis)
        return jnp.transpose(w.reshape(D, H, Dh), (1, 0, 2))

    return {
        # softmax scale folded into Q projection (weights AND bias)
        "wq": head_major_in(p["wq"] * scale).astype(jnp.bfloat16),
        "bq": (p["bq"] * scale).reshape(H, 1, Dh).astype(jnp.float32),
        "wk": head_major_in(p["wk"]).astype(jnp.bfloat16),
        "bk": p["bk"].reshape(H, 1, Dh).astype(jnp.float32),
        "wv": head_major_in(p["wv"]).astype(jnp.bfloat16),
        "bv": p["bv"].reshape(H, 1, Dh).astype(jnp.float32),
        # output projection pre-split by head: row blocks -> [H, Dh, D]
        "wo": p["wo"].reshape(H, Dh, D).astype(jnp.bfloat16),
        "bo": p["bo"].reshape(1, D).astype(jnp.float32),
    }


def prepare_params(p):
    """One-time packing/casting of raw f32 params into kernel-ready layouts."""
    H = p["num_heads"]
    D = p["ln1_g"].shape[0]
    F = p["ff_w1"].shape[1]
    return {
        "num_heads": H,
        "self_attn": _prep_attn(p["self_attn"], H),
        "cross_attn": _prep_attn(p["cross_attn"], H),
        "ff_w1": p["ff_w1"].astype(jnp.bfloat16),
        "ff_b1": p["ff_b1"].reshape(1, F).astype(jnp.float32),
        "ff_w2": p["ff_w2"].astype(jnp.bfloat16),
        "ff_b2": p["ff_b2"].reshape(1, D).astype(jnp.float32),
        "ln1_g": p["ln1_g"].reshape(1, D).astype(jnp.float32),
        "ln1_b": p["ln1_b"].reshape(1, D).astype(jnp.float32),
        "ln2_g": p["ln2_g"].reshape(1, D).astype(jnp.float32),
        "ln2_b": p["ln2_b"].reshape(1, D).astype(jnp.float32),
        "ln3_g": p["ln3_g"].reshape(1, D).astype(jnp.float32),
        "ln3_b": p["ln3_b"].reshape(1, D).astype(jnp.float32),
    }


# ---------------- fused MHA + residual + LayerNorm ----------------

def _mha_ln_kernel(*refs, num_heads, eps, has_mask):
    if has_mask:
        (q_ref, kv_ref, m_ref, wq_ref, bq_ref, wk_ref, bk_ref, wv_ref, bv_ref,
         wo_ref, bo_ref, g_ref, b_ref, o_ref, acc_ref) = refs
    else:
        (q_ref, kv_ref, wq_ref, bq_ref, wk_ref, bk_ref, wv_ref, bv_ref,
         wo_ref, bo_ref, g_ref, b_ref, o_ref, acc_ref) = refs
        m_ref = None

    x = q_ref[...]                       # f32 [tq, D]  (kept for residual + LN)
    xq_b = x.astype(jnp.bfloat16)        # cast once, reused for Q projection
    xkv_b = kv_ref[...].astype(jnp.bfloat16)
    mask = m_ref[...] if has_mask else None

    acc_ref[...] = jnp.zeros_like(acc_ref)

    def head_body(h, carry):
        # head-major weights: leading-axis dynamic index, no lane-misaligned slices
        q_h = jnp.dot(xq_b, wq_ref[h], preferred_element_type=jnp.float32) + bq_ref[h]
        k_h = jnp.dot(xkv_b, wk_ref[h], preferred_element_type=jnp.float32) + bk_ref[h]
        v_h = jnp.dot(xkv_b, wv_ref[h], preferred_element_type=jnp.float32) + bv_ref[h]

        # scores = (scale*Q_h) K_h^T via contracting dims (scale already folded in Wq)
        s = jax.lax.dot_general(q_h.astype(jnp.bfloat16), k_h.astype(jnp.bfloat16),
                                (((1,), (1,)), ((), ())),
                                preferred_element_type=jnp.float32)
        if has_mask:
            s = s + mask
        s = s - jnp.max(s, axis=-1, keepdims=True)
        p = jnp.exp(s)
        p = p * pl.reciprocal(jnp.sum(p, axis=-1, keepdims=True), approx=True)

        hv = jnp.dot(p.astype(jnp.bfloat16), v_h.astype(jnp.bfloat16),
                     preferred_element_type=jnp.float32)
        # fold output projection into the loop: no concat, bounded live ranges
        acc_ref[...] += jnp.dot(hv.astype(jnp.bfloat16), wo_ref[h],
                                preferred_element_type=jnp.float32)
        return carry

    jax.lax.fori_loop(0, num_heads, head_body, 0)

    # residual + LayerNorm epilogue (all in VMEM)
    y = x + acc_ref[...] + bo_ref[...]
    o_ref[...] = _layernorm_f32(y, g_ref[...], b_ref[...], eps).astype(o_ref.dtype)


def mha_ln_block(ap, q_in, kv_in, mask_add, num_heads, ln_g, ln_b,
                 eps=_LN_EPS, q_tile=256):
    B, Sq, D = q_in.shape
    Skv = kv_in.shape[1]
    H = num_heads
    Dh = D // H
    tq = Sq if Sq <= q_tile else q_tile
    has_mask = mask_add is not None

    w3 = lambda shape: pl.BlockSpec(shape, lambda b, i: (0, 0, 0))
    w2 = lambda shape: pl.BlockSpec(shape, lambda b, i: (0, 0))

    in_specs = [
        pl.BlockSpec((pl.Squeezed(), tq, D), lambda b, i: (b, i, 0)),
        pl.BlockSpec((pl.Squeezed(), Skv, D), lambda b, i: (b, 0, 0)),
    ]
    args = [q_in, kv_in]
    if has_mask:
        in_specs.append(pl.BlockSpec((tq, Skv), lambda b, i: (i, 0)))
        args.append(mask_add.astype(jnp.float32))
    in_specs += [
        w3((H, D, Dh)), w3((H, 1, Dh)),     # wq, bq   (scale pre-folded)
        w3((H, D, Dh)), w3((H, 1, Dh)),     # wk, bk
        w3((H, D, Dh)), w3((H, 1, Dh)),     # wv, bv
        w3((H, Dh, D)), w2((1, D)),         # wo (head-major rows), bo
        w2((1, D)), w2((1, D)),             # ln gamma, beta
    ]
    args += [ap["wq"], ap["bq"], ap["wk"], ap["bk"], ap["wv"], ap["bv"],
             ap["wo"], ap["bo"], ln_g, ln_b]

    kernel = functools.partial(_mha_ln_kernel, num_heads=H, eps=eps, has_mask=has_mask)
    return pl.pallas_call(
        kernel,
        grid=(B, pl.cdiv(Sq, tq)),
        in_specs=in_specs,
        out_specs=pl.BlockSpec((pl.Squeezed(), tq, D), lambda b, i: (b, i, 0)),
        out_shape=jax.ShapeDtypeStruct((B, Sq, D), q_in.dtype),
        scratch_shapes=[pltpu.VMEM((tq, D), jnp.float32)],
        compiler_params=pltpu.CompilerParams(
            dimension_semantics=("parallel", "parallel"),
            vmem_limit_bytes=_VMEM_LIMIT),
    )(*args)


# ---------------- fused FFN + residual + LayerNorm ----------------

def _ffn_ln_kernel(x_ref, w1_ref, b1_ref, w2_ref, b2_ref, g_ref, b_ref, o_ref, *, eps):
    x = x_ref[...]
    xb = x.astype(jnp.bfloat16)
    h = jnp.dot(xb, w1_ref[...], preferred_element_type=jnp.float32) + b1_ref[...]
    h = jnp.maximum(h, 0.0)
    f = jnp.dot(h.astype(jnp.bfloat16), w2_ref[...],
                preferred_element_type=jnp.float32) + b2_ref[...]
    y = x + f
    o_ref[...] = _layernorm_f32(y, g_ref[...], b_ref[...], eps).astype(o_ref.dtype)


def ffn_ln_block(pp, x2d, ln_g, ln_b, eps=_LN_EPS, row_tile=128):
    R, D = x2d.shape
    F = pp["ff_w1"].shape[1]
    tr = R if R <= row_tile else row_tile
    const2d = lambda shape: pl.BlockSpec(shape, lambda i: (0, 0))
    return pl.pallas_call(
        functools.partial(_ffn_ln_kernel, eps=eps),
        grid=(pl.cdiv(R, tr),),
        in_specs=[
            pl.BlockSpec((tr, D), lambda i: (i, 0)),
            const2d((D, F)), const2d((1, F)),
            const2d((F, D)), const2d((1, D)),
            const2d((1, D)), const2d((1, D)),
        ],
        out_specs=pl.BlockSpec((tr, D), lambda i: (i, 0)),
        out_shape=jax.ShapeDtypeStruct((R, D), x2d.dtype),
        compiler_params=pltpu.CompilerParams(
            dimension_semantics=("parallel",),
            vmem_limit_bytes=_VMEM_LIMIT),
    )(x2d, pp["ff_w1"], pp["ff_b1"], pp["ff_w2"], pp["ff_b2"], ln_g, ln_b)


# ---------------- plain LayerNorm (enc_out is None branch) ----------------

def _ln_kernel(x_ref, g_ref, b_ref, o_ref, *, eps):
    o_ref[...] = _layernorm_f32(x_ref[...], g_ref[...], b_ref[...], eps).astype(o_ref.dtype)


def layernorm_block(x2d, g, b, eps=_LN_EPS, row_tile=256):
    R, D = x2d.shape
    tr = R if R <= row_tile else row_tile
    return pl.pallas_call(
        functools.partial(_ln_kernel, eps=eps),
        grid=(pl.cdiv(R, tr),),
        in_specs=[pl.BlockSpec((tr, D), lambda i: (i, 0)),
                  pl.BlockSpec((1, D), lambda i: (0, 0)),
                  pl.BlockSpec((1, D), lambda i: (0, 0))],
        out_specs=pl.BlockSpec((tr, D), lambda i: (i, 0)),
        out_shape=jax.ShapeDtypeStruct((R, D), x2d.dtype),
        compiler_params=pltpu.CompilerParams(
            dimension_semantics=("parallel",),
            vmem_limit_bytes=_VMEM_LIMIT),
    )(x2d, g, b)


# ---------------- DecoderLayer forward (takes PREPARED params) ----------------

def decoder_layer(pp, x, enc_out=None, src_mask_add=None, tgt_mask_add=None):
    B, S, D = x.shape
    H = pp["num_heads"]

    # x = norm1(x + dropout(self_attn(x, x, x, tgt_mask)))   [dropout = identity, eval]
    x = mha_ln_block(pp["self_attn"], x, x, tgt_mask_add, H, pp["ln1_g"], pp["ln1_b"])

    if enc_out is not None:
        # x = norm2(x + dropout(cross_attn(x, enc, enc, src_mask)))
        x = mha_ln_block(pp["cross_attn"], x, enc_out, src_mask_add, H,
                         pp["ln2_g"], pp["ln2_b"])
    else:
        # x = norm2(x)  — plain LN, no zero-residual round trip
        x = layernorm_block(x.reshape(B * S, D), pp["ln2_g"], pp["ln2_b"]).reshape(B, S, D)

    # x = norm3(x + dropout(ff(x)))
    x = ffn_ln_block(pp, x.reshape(B * S, D), pp["ln3_g"], pp["ln3_b"]).reshape(B, S, D)
    return x


# ---------------- Pure-JAX f32 reference ----------------

def _ref_ln(x, g, b, eps=_LN_EPS):
    mu = x.mean(-1, keepdims=True)
    var = ((x - mu) ** 2).mean(-1, keepdims=True)
    return (x - mu) / jnp.sqrt(var + eps) * g + b


def _ref_mha(p, q_in, k_in, v_in, mask_add, H):
    B, Sq, D = q_in.shape
    Skv = k_in.shape[1]
    Dh = D // H
    q = (q_in.reshape(-1, D) @ p["wq"] + p["bq"]).reshape(B, Sq, H, Dh).transpose(0, 2, 1, 3)
    k = (k_in.reshape(-1, D) @ p["wk"] + p["bk"]).reshape(B, Skv, H, Dh).transpose(0, 2, 1, 3)
    v = (v_in.reshape(-1, D) @ p["wv"] + p["bv"]).reshape(B, Skv, H, Dh).transpose(0, 2, 1, 3)
    s = jnp.einsum("bhqd,bhkd->bhqk", q, k) / math.sqrt(Dh)
    if mask_add is not None:
        s = s + mask_add[None, None]
    a = jax.nn.softmax(s, axis=-1)
    o = jnp.einsum("bhqk,bhkd->bhqd", a, v).transpose(0, 2, 1, 3).reshape(B, Sq, D)
    return (o.reshape(-1, D) @ p["wo"] + p["bo"]).reshape(B, Sq, D)


def _ref_decoder(p, x, enc_out, src_mask, tgt_mask):
    B, S, D = x.shape
    H = p["num_heads"]
    x = _ref_ln(x + _ref_mha(p["self_attn"], x, x, x, tgt_mask, H), p["ln1_g"], p["ln1_b"])
    if enc_out is not None:
        x = _ref_ln(x + _ref_mha(p["cross_attn"], x, enc_out, enc_out, src_mask, H),
                    p["ln2_g"], p["ln2_b"])
    else:
        x = _ref_ln(x, p["ln2_g"], p["ln2_b"])
    h = jnp.maximum(x.reshape(-1, D) @ p["ff_w1"] + p["ff_b1"], 0.0)
    f = (h @ p["ff_w2"] + p["ff_b2"]).reshape(B, S, D)
    x = _ref_ln(x + f, p["ln3_g"], p["ln3_b"])
    return x


# ---------------- Deterministic parameter init (raw, PyTorch-like) ----------------

def init_params(key, d_model, num_heads, dim_ff):
    keys = iter(jax.random.split(key, 32))

    def nrm(shape, scale=0.05):
        return scale * jax.random.normal(next(keys), shape, jnp.float32)

    def mha_params():
        return {
            "wq": nrm((d_model, d_model)), "bq": nrm((d_model,)),
            "wk": nrm((d_model, d_model)), "bk": nrm((d_model,)),
            "wv": nrm((d_model, d_model)), "bv": nrm((d_model,)),
            "wo": nrm((d_model, d_model)), "bo": nrm((d_model,)),
        }

    return {
        "num_heads": num_heads,
        "self_attn": mha_params(),
        "cross_attn": mha_params(),
        "ff_w1": nrm((d_model, dim_ff)), "ff_b1": nrm((dim_ff,)),
        "ff_w2": nrm((dim_ff, d_model)), "ff_b2": nrm((d_model,)),
        "ln1_g": 1.0 + nrm((d_model,), 0.1), "ln1_b": nrm((d_model,), 0.1),
        "ln2_g": 1.0 + nrm((d_model,), 0.1), "ln2_b": nrm((d_model,), 0.1),
        "ln3_g": 1.0 + nrm((d_model,), 0.1), "ln3_b": nrm((d_model,), 0.1),
    }


if __name__ == "__main__":
    B, S_tgt, S_src, D, H, F = 2, 8, 8, 32, 4, 64
    key = jax.random.PRNGKey(0)
    k_p, k_x, k_e = jax.random.split(key, 3)

    params = init_params(k_p, D, H, F)
    prepared = prepare_params(params)          # one-time packing / casting (hoisted)

    x = jax.random.normal(k_x, (B, S_tgt, D), jnp.float32)
    enc_out = jax.random.normal(k_e, (B, S_src, D), jnp.float32)

    # Causal additive mask for self-attention; cross-attention uses no mask (None path).
    causal = jnp.tril(jnp.ones((S_tgt, S_tgt), jnp.float32))
    tgt_mask = jnp.where(causal == 0, -1e9, 0.0).astype(jnp.float32)

    # With encoder output (self-attn + cross-attn[no mask] + FFN).
    out = decoder_layer(prepared, x, enc_out, None, tgt_mask)
    out = jax.block_until_ready(out)
    ref = _ref_decoder(params, x, enc_out, None, tgt_mask)
    assert out.shape == (B, S_tgt, D)
    # bf16 MXU operands vs f32 reference -> slightly widened tolerance.
    assert jnp.allclose(out, ref, atol=5e-2, rtol=5e-2), "mismatch vs JAX reference (enc)"

    # Without encoder output (exercises the plain-LN branch).
    out2 = decoder_layer(prepared, x, None, None, tgt_mask)
    out2 = jax.block_until_ready(out2)
    ref2 = _ref_decoder(params, x, None, None, tgt_mask)
    assert out2.shape == (B, S_tgt, D)
    assert jnp.allclose(out2, ref2, atol=5e-2, rtol=5e-2), "mismatch vs JAX reference (no enc)"

    print("KERNEL_OK")
</pallas_src>

<mosaic_0001>
module attributes {stable_mosaic.version = 11 : i64} {
  func.func @_mha_ln_kernel(%arg0: i32, %arg1: i32, %arg2: memref<1x8x32xf32, #tpu.memory_space<vmem>>, %arg3: memref<1x8x32xf32, #tpu.memory_space<vmem>>, %arg4: memref<8x8xf32, #tpu.memory_space<vmem>>, %arg5: memref<4x32x8xbf16, #tpu.memory_space<vmem>>, %arg6: memref<4x1x8xf32, #tpu.memory_space<vmem>>, %arg7: memref<4x32x8xbf16, #tpu.memory_space<vmem>>, %arg8: memref<4x1x8xf32, #tpu.memory_space<vmem>>, %arg9: memref<4x32x8xbf16, #tpu.memory_space<vmem>>, %arg10: memref<4x1x8xf32, #tpu.memory_space<vmem>>, %arg11: memref<4x8x32xbf16, #tpu.memory_space<vmem>>, %arg12: memref<1x32xf32, #tpu.memory_space<vmem>>, %arg13: memref<1x32xf32, #tpu.memory_space<vmem>>, %arg14: memref<1x32xf32, #tpu.memory_space<vmem>>, %arg15: memref<1x8x32xf32, #tpu.memory_space<vmem>>, %arg16: memref<8x32xf32, #tpu.memory_space<vmem>>) attributes {dimension_semantics = [#tpu.dimension_semantics<parallel>, #tpu.dimension_semantics<parallel>], iteration_bounds = array<i64: 2, 1>, scalar_prefetch = 0 : i64, scratch_operands = 1 : i64, tpu.core_type = #tpu.core_type<tc>, window_params = [{transform_indices = @transform_0, window_bounds = array<i64: 1, 8, 32>}, {transform_indices = @transform_1, window_bounds = array<i64: 1, 8, 32>}, {transform_indices = @transform_2, window_bounds = array<i64: 8, 8>}, {pipeline_mode = #tpu.pipeline_mode<synchronous>, transform_indices = @transform_3, window_bounds = array<i64: 4, 32, 8>}, {pipeline_mode = #tpu.pipeline_mode<synchronous>, transform_indices = @transform_4, window_bounds = array<i64: 4, 1, 8>}, {pipeline_mode = #tpu.pipeline_mode<synchronous>, transform_indices = @transform_5, window_bounds = array<i64: 4, 32, 8>}, {pipeline_mode = #tpu.pipeline_mode<synchronous>, transform_indices = @transform_6, window_bounds = array<i64: 4, 1, 8>}, {pipeline_mode = #tpu.pipeline_mode<synchronous>, transform_indices = @transform_7, window_bounds = array<i64: 4, 32, 8>}, {pipeline_mode = #tpu.pipeline_mode<synchronous>, transform_indices = @transform_8, window_bounds = array<i64: 4, 1, 8>}, {pipeline_mode = #tpu.pipeline_mode<synchronous>, transform_indices = @transform_9, window_bounds = array<i64: 4, 8, 32>}, {pipeline_mode = #tpu.pipeline_mode<synchronous>, transform_indices = @transform_10, window_bounds = array<i64: 1, 32>}, {pipeline_mode = #tpu.pipeline_mode<synchronous>, transform_indices = @transform_11, window_bounds = array<i64: 1, 32>}, {pipeline_mode = #tpu.pipeline_mode<synchronous>, transform_indices = @transform_12, window_bounds = array<i64: 1, 32>}, {transform_indices = @transform_13, window_bounds = array<i64: 1, 8, 32>}]} {
    %c0 = arith.constant 0 : index
    %c0_0 = arith.constant 0 : index
    %c0_1 = arith.constant 0 : index
    %0 = vector.load %arg2[%c0, %c0_0, %c0_1] : memref<1x8x32xf32, #tpu.memory_space<vmem>>, vector<1x8x32xf32>
    %1 = vector.shape_cast %0 : vector<1x8x32xf32> to vector<8x32xf32>
    %2 = arith.truncf %1 : vector<8x32xf32> to vector<8x32xbf16>
    %c0_2 = arith.constant 0 : index
    %c0_3 = arith.constant 0 : index
    %c0_4 = arith.constant 0 : index
    %3 = vector.load %arg3[%c0_2, %c0_3, %c0_4] : memref<1x8x32xf32, #tpu.memory_space<vmem>>, vector<1x8x32xf32>
    %4 = vector.shape_cast %3 : vector<1x8x32xf32> to vector<8x32xf32>
    %5 = arith.truncf %4 : vector<8x32xf32> to vector<8x32xbf16>
    %c0_5 = arith.constant 0 : index
    %c0_6 = arith.constant 0 : index
    %6 = vector.load %arg4[%c0_5, %c0_6] : memref<8x8xf32, #tpu.memory_space<vmem>>, vector<8x8xf32>
    %cst = arith.constant 0.000000e+00 : f32
    %7 = vector.broadcast %cst : f32 to vector<8x32xf32>
    %c0_7 = arith.constant 0 : index
    %c0_8 = arith.constant 0 : index
    %8 = vector.load %arg16[%c0_7, %c0_8] : memref<8x32xf32, #tpu.memory_space<vmem>>, vector<8x32xf32>
    tpu.vector_store %arg16[%c0_7, %c0_8], %7 {strides = array<i32>} : memref<8x32xf32, #tpu.memory_space<vmem>>, vector<8x32xf32>,
    %c0_i32 = arith.constant 0 : i32
    %c4_i32 = arith.constant 4 : i32
    %9 = arith.addi %c0_i32, %c4_i32 : i32
    %c1_i32 = arith.constant 1 : i32
    scf.for %arg17 = %c0_i32 to %9 step %c1_i32  : i32 {
      %42 = arith.index_cast %arg17 : i32 to index
      %c0_26 = arith.constant 0 : index
      %c0_27 = arith.constant 0 : index
      %43 = vector.load %arg5[%42, %c0_26, %c0_27] : memref<4x32x8xbf16, #tpu.memory_space<vmem>>, vector<1x32x8xbf16>
      %44 = vector.shape_cast %43 : vector<1x32x8xbf16> to vector<32x8xbf16>
      %cst_28 = arith.constant dense<0.000000e+00> : vector<8x8xf32>
      %45 = tpu.matmul %2, %44, %cst_28 {dimension_numbers = #tpu.dot_dimension_numbers<[1], [0], [0], [1], [0, 0, 1, 1], [], []>} : vector<8x32xbf16>, vector<32x8xbf16>, vector<8x8xf32> -> vector<8x8xf32>
      %46 = arith.index_cast %arg17 : i32 to index
      %c0_29 = arith.constant 0 : index
      %c0_30 = arith.constant 0 : index
      %47 = vector.load %arg6[%46, %c0_29, %c0_30] : memref<4x1x8xf32, #tpu.memory_space<vmem>>, vector<1x1x8xf32>
      %48 = vector.shape_cast %47 : vector<1x1x8xf32> to vector<1x8xf32>
      %49 = vector.broadcast %48 : vector<1x8xf32> to vector<8x8xf32>
      %50 = arith.addf %45, %49 : vector<8x8xf32>
      %51 = arith.index_cast %arg17 : i32 to index
      %c0_31 = arith.constant 0 : index
      %c0_32 = arith.constant 0 : index
      %52 = vector.load %arg7[%51, %c0_31, %c0_32] : memref<4x32x8xbf16, #tpu.memory_space<vmem>>, vector<1x32x8xbf16>
      %53 = vector.shape_cast %52 : vector<1x32x8xbf16> to vector<32x8xbf16>
      %cst_33 = arith.constant dense<0.000000e+00> : vector<8x8xf32>
      %54 = tpu.matmul %5, %53, %cst_33 {dimension_numbers = #tpu.dot_dimension_numbers<[1], [0], [0], [1], [0, 0, 1, 1], [], []>} : vector<8x32xbf16>, vector<32x8xbf16>, vector<8x8xf32> -> vector<8x8xf32>
      %55 = arith.index_cast %arg17 : i32 to index
      %c0_34 = arith.constant 0 : index
      %c0_35 = arith.constant 0 : index
      %56 = vector.load %arg8[%55, %c0_34, %c0_35] : memref<4x1x8xf32, #tpu.memory_space<vmem>>, vector<1x1x8xf32>
      %57 = vector.shape_cast %56 : vector<1x1x8xf32> to vector<1x8xf32>
      %58 = vector.broadcast %57 : vector<1x8xf32> to vector<8x8xf32>
      %59 = arith.addf %54, %58 : vector<8x8xf32>
      %60 = arith.index_cast %arg17 : i32 to index
      %c0_36 = arith.constant 0 : index
      %c0_37 = arith.constant 0 : index
      %61 = vector.load %arg9[%60, %c0_36, %c0_37] : memref<4x32x8xbf16, #tpu.memory_space<vmem>>, vector<1x32x8xbf16>
      %62 = vector.shape_cast %61 : vector<1x32x8xbf16> to vector<32x8xbf16>
      %cst_38 = arith.constant dense<0.000000e+00> : vector<8x8xf32>
      %63 = tpu.matmul %5, %62, %cst_38 {dimension_numbers = #tpu.dot_dimension_numbers<[1], [0], [0], [1], [0, 0, 1, 1], [], []>} : vector<8x32xbf16>, vector<32x8xbf16>, vector<8x8xf32> -> vector<8x8xf32>
      %64 = arith.index_cast %arg17 : i32 to index
      %c0_39 = arith.constant 0 : index
      %c0_40 = arith.constant 0 : index
      %65 = vector.load %arg10[%64, %c0_39, %c0_40] : memref<4x1x8xf32, #tpu.memory_space<vmem>>, vector<1x1x8xf32>
      %66 = vector.shape_cast %65 : vector<1x1x8xf32> to vector<1x8xf32>
      %67 = vector.broadcast %66 : vector<1x8xf32> to vector<8x8xf32>
      %68 = arith.addf %63, %67 : vector<8x8xf32>
      %69 = arith.truncf %50 : vector<8x8xf32> to vector<8x8xbf16>
      %70 = arith.truncf %59 : vector<8x8xf32> to vector<8x8xbf16>
      %cst_41 = arith.constant dense<0.000000e+00> : vector<8x8xf32>
      %71 = tpu.matmul %69, %70, %cst_41 {dimension_numbers = #tpu.dot_dimension_numbers<[1], [1], [0], [0], [0, 0, 1, 0], [], []>} : vector<8x8xbf16>, vector<8x8xbf16>, vector<8x8xf32> -> vector<8x8xf32>
      %72 = arith.addf %71, %6 : vector<8x8xf32>
      %cst_42 = arith.constant dense<0xFF800000> : vector<8xf32>
      %73 = vector.multi_reduction <maximumf>, %72, %cst_42 [1] : vector<8x8xf32> to vector<8xf32>
      %74 = vector.shape_cast %73 : vector<8xf32> to vector<8x1xf32>
      %75 = vector.broadcast %74 : vector<8x1xf32> to vector<8x8xf32>
      %76 = arith.subf %72, %75 : vector<8x8xf32>
      %77 = math.exp %76 : vector<8x8xf32>
      %cst_43 = arith.constant dense<0.000000e+00> : vector<8xf32>
      %78 = vector.multi_reduction <add>, %77, %cst_43 [1] : vector<8x8xf32> to vector<8xf32>
      %79 = vector.shape_cast %78 : vector<8xf32> to vector<8x1xf32>
      %80 = tpu.reciprocal %79 {approx = true} : vector<8x1xf32> -> vector<8x1xf32>
      %81 = vector.broadcast %80 : vector<8x1xf32> to vector<8x8xf32>
      %82 = arith.mulf %77, %81 : vector<8x8xf32>
      %83 = arith.truncf %82 : vector<8x8xf32> to vector<8x8xbf16>
      %84 = arith.truncf %68 : vector<8x8xf32> to vector<8x8xbf16>
      %cst_44 = arith.constant dense<0.000000e+00> : vector<8x8xf32>
      %85 = tpu.matmul %83, %84, %cst_44 {dimension_numbers = #tpu.dot_dimension_numbers<[1], [0], [0], [1], [0, 0, 1, 1], [], []>} : vector<8x8xbf16>, vector<8x8xbf16>, vector<8x8xf32> -> vector<8x8xf32>
      %c0_45 = arith.constant 0 : index
      %c0_46 = arith.constant 0 : index
      %86 = vector.load %arg16[%c0_45, %c0_46] : memref<8x32xf32, #tpu.memory_space<vmem>>, vector<8x32xf32>
      %87 = arith.truncf %85 : vector<8x8xf32> to vector<8x8xbf16>
      %88 = arith.index_cast %arg17 : i32 to index
      %c0_47 = arith.constant 0 : index
      %c0_48 = arith.constant 0 : index
      %89 = vector.load %arg11[%88, %c0_47, %c0_48] : memref<4x8x32xbf16, #tpu.memory_space<vmem>>, vector<1x8x32xbf16>
      %90 = vector.shape_cast %89 : vector<1x8x32xbf16> to vector<8x32xbf16>
      %cst_49 = arith.constant dense<0.000000e+00> : vector<8x32xf32>
      %91 = tpu.matmul %87, %90, %cst_49 {dimension_numbers = #tpu.dot_dimension_numbers<[1], [0], [0], [1], [0, 0, 1, 1], [], []>} : vector<8x8xbf16>, vector<8x32xbf16>, vector<8x32xf32> -> vector<8x32xf32>
      %92 = arith.addf %86, %91 : vector<8x32xf32>
      %c0_50 = arith.constant 0 : index
      %c0_51 = arith.constant 0 : index
      %93 = vector.load %arg16[%c0_50, %c0_51] : memref<8x32xf32, #tpu.memory_space<vmem>>, vector<8x32xf32>
      tpu.vector_store %arg16[%c0_50, %c0_51], %92 {strides = array<i32>} : memref<8x32xf32, #tpu.memory_space<vmem>>, vector<8x32xf32>,
    }
    %c4_i32_9 = arith.constant 4 : i32
    %c0_10 = arith.constant 0 : index
    %c0_11 = arith.constant 0 : index
    %10 = vector.load %arg16[%c0_10, %c0_11] : memref<8x32xf32, #tpu.memory_space<vmem>>, vector<8x32xf32>
    %11 = arith.addf %1, %10 : vector<8x32xf32>
    %c0_12 = arith.constant 0 : index
    %c0_13 = arith.constant 0 : index
    %12 = vector.load %arg12[%c0_12, %c0_13] : memref<1x32xf32, #tpu.memory_space<vmem>>, vector<1x32xf32>
    %13 = vector.broadcast %12 : vector<1x32xf32> to vector<8x32xf32>
    %14 = arith.addf %11, %13 : vector<8x32xf32>
    %c0_14 = arith.constant 0 : index
    %c0_15 = arith.constant 0 : index
    %15 = vector.load %arg13[%c0_14, %c0_15] : memref<1x32xf32, #tpu.memory_space<vmem>>, vector<1x32xf32>
    %c0_16 = arith.constant 0 : index
    %c0_17 = arith.constant 0 : index
    %16 = vector.load %arg14[%c0_16, %c0_17] : memref<1x32xf32, #tpu.memory_space<vmem>>, vector<1x32xf32>
    %cst_18 = arith.constant dense<0.000000e+00> : vector<8xf32>
    %17 = vector.multi_reduction <add>, %14, %cst_18 [1] : vector<8x32xf32> to vector<8xf32>
    %18 = vector.shape_cast %17 : vector<8xf32> to vector<8x1xf32>
    %cst_19 = arith.constant 3.200000e+01 : f32
    %19 = vector.broadcast %cst_19 : f32 to vector<8x1xf32>
    %20 = arith.divf %18, %19 : vector<8x1xf32>
    %21 = vector.broadcast %20 : vector<8x1xf32> to vector<8x32xf32>
    %22 = arith.subf %14, %21 : vector<8x32xf32>
    %23 = arith.mulf %22, %22 : vector<8x32xf32>
    %cst_20 = arith.constant dense<0.000000e+00> : vector<8xf32>
    %24 = vector.multi_reduction <add>, %23, %cst_20 [1] : vector<8x32xf32> to vector<8xf32>
    %25 = vector.shape_cast %24 : vector<8xf32> to vector<8x1xf32>
    %cst_21 = arith.constant 3.200000e+01 : f32
    %26 = vector.broadcast %cst_21 : f32 to vector<8x1xf32>
    %27 = arith.divf %25, %26 : vector<8x1xf32>
    %28 = vector.broadcast %20 : vector<8x1xf32> to vector<8x32xf32>
    %29 = arith.subf %14, %28 : vector<8x32xf32>
    %cst_22 = arith.constant 9.99999974E-6 : f32
    %30 = vector.broadcast %cst_22 : f32 to vector<8x1xf32>
    %31 = arith.addf %27, %30 : vector<8x1xf32>
    %32 = math.rsqrt %31 : vector<8x1xf32>
    %33 = vector.broadcast %32 : vector<8x1xf32> to vector<8x32xf32>
    %34 = arith.mulf %29, %33 : vector<8x32xf32>
    %35 = vector.broadcast %15 : vector<1x32xf32> to vector<8x32xf32>
    %36 = arith.mulf %34, %35 : vector<8x32xf32>
    %37 = vector.broadcast %16 : vector<1x32xf32> to vector<8x32xf32>
    %38 = arith.addf %36, %37 : vector<8x32xf32>
    %c0_23 = arith.constant 0 : index
    %c0_24 = arith.constant 0 : index
    %c0_25 = arith.constant 0 : index
    %39 = vector.load %arg15[%c0_23, %c0_24, %c0_25] : memref<1x8x32xf32, #tpu.memory_space<vmem>>, vector<1x8x32xf32>
    %40 = vector.shape_cast %39 : vector<1x8x32xf32> to vector<8x32xf32>
    %41 = vector.shape_cast %38 : vector<8x32xf32> to vector<1x8x32xf32>
    tpu.vector_store %arg15[%c0_23, %c0_24, %c0_25], %41 {strides = array<i32>} : memref<1x8x32xf32, #tpu.memory_space<vmem>>, vector<1x8x32xf32>,
    return
  }
  func.func @transform_0(%arg0: i32, %arg1: i32) -> (i32, i32, i32) {
    %c0_i32 = arith.constant 0 : i32
    %c0_i32_0 = arith.constant 0 : i32
    return %arg0, %arg1, %c0_i32 : i32, i32, i32
  }
  func.func @transform_1(%arg0: i32, %arg1: i32) -> (i32, i32, i32) {
    %c0_i32 = arith.constant 0 : i32
    %c0_i32_0 = arith.constant 0 : i32
    %c0_i32_1 = arith.constant 0 : i32
    return %arg0, %c0_i32, %c0_i32_0 : i32, i32, i32
  }
  func.func @transform_2(%arg0: i32, %arg1: i32) -> (i32, i32) {
    %c0_i32 = arith.constant 0 : i32
    %c0_i32_0 = arith.constant 0 : i32
    return %arg1, %c0_i32 : i32, i32
  }
  func.func @transform_3(%arg0: i32, %arg1: i32) -> (i32, i32, i32) {
    %c0_i32 = arith.constant 0 : i32
    %c0_i32_0 = arith.constant 0 : i32
    %c0_i32_1 = arith.constant 0 : i32
    %c0_i32_2 = arith.constant 0 : i32
    return %c0_i32, %c0_i32_0, %c0_i32_1 : i32, i32, i32
  }
  func.func @transform_4(%arg0: i32, %arg1: i32) -> (i32, i32, i32) {
    %c0_i32 = arith.constant 0 : i32
    %c0_i32_0 = arith.constant 0 : i32
    %c0_i32_1 = arith.constant 0 : i32
    %c0_i32_2 = arith.constant 0 : i32
    return %c0_i32, %c0_i32_0, %c0_i32_1 : i32, i32, i32
  }
  func.func @transform_5(%arg0: i32, %arg1: i32) -> (i32, i32, i32) {
    %c0_i32 = arith.constant 0 : i32
    %c0_i32_0 = arith.constant 0 : i32
    %c0_i32_1 = arith.constant 0 : i32
    %c0_i32_2 = arith.constant 0 : i32
    return %c0_i32, %c0_i32_0, %c0_i32_1 : i32, i32, i32
  }
  func.func @transform_6(%arg0: i32, %arg1: i32) -> (i32, i32, i32) {
    %c0_i32 = arith.constant 0 : i32
    %c0_i32_0 = arith.constant 0 : i32
    %c0_i32_1 = arith.constant 0 : i32
    %c0_i32_2 = arith.constant 0 : i32
    return %c0_i32, %c0_i32_0, %c0_i32_1 : i32, i32, i32
  }
  func.func @transform_7(%arg0: i32, %arg1: i32) -> (i32, i32, i32) {
    %c0_i32 = arith.constant 0 : i32
    %c0_i32_0 = arith.constant 0 : i32
    %c0_i32_1 = arith.constant 0 : i32
    %c0_i32_2 = arith.constant 0 : i32
    return %c0_i32, %c0_i32_0, %c0_i32_1 : i32, i32, i32
  }
  func.func @transform_8(%arg0: i32, %arg1: i32) -> (i32, i32, i32) {
    %c0_i32 = arith.constant 0 : i32
    %c0_i32_0 = arith.constant 0 : i32
    %c0_i32_1 = arith.constant 0 : i32
    %c0_i32_2 = arith.constant 0 : i32
    return %c0_i32, %c0_i32_0, %c0_i32_1 : i32, i32, i32
  }
  func.func @transform_9(%arg0: i32, %arg1: i32) -> (i32, i32, i32) {
    %c0_i32 = arith.constant 0 : i32
    %c0_i32_0 = arith.constant 0 : i32
    %c0_i32_1 = arith.constant 0 : i32
    %c0_i32_2 = arith.constant 0 : i32
    return %c0_i32, %c0_i32_0, %c0_i32_1 : i32, i32, i32
  }
  func.func @transform_10(%arg0: i32, %arg1: i32) -> (i32, i32) {
    %c0_i32 = arith.constant 0 : i32
    %c0_i32_0 = arith.constant 0 : i32
    %c0_i32_1 = arith.constant 0 : i32
    return %c0_i32, %c0_i32_0 : i32, i32
  }
  func.func @transform_11(%arg0: i32, %arg1: i32) -> (i32, i32) {
    %c0_i32 = arith.constant 0 : i32
    %c0_i32_0 = arith.constant 0 : i32
    %c0_i32_1 = arith.constant 0 : i32
    return %c0_i32, %c0_i32_0 : i32, i32
  }
  func.func @transform_12(%arg0: i32, %arg1: i32) -> (i32, i32) {
    %c0_i32 = arith.constant 0 : i32
    %c0_i32_0 = arith.constant 0 : i32
    %c0_i32_1 = arith.constant 0 : i32
    return %c0_i32, %c0_i32_0 : i32, i32
  }
  func.func @transform_13(%arg0: i32, %arg1: i32) -> (i32, i32, i32) {
    %c0_i32 = arith.constant 0 : i32
    %c0_i32_0 = arith.constant 0 : i32
    return %arg0, %arg1, %c0_i32 : i32, i32, i32
  }
}

</mosaic_0001>

<bundles_post_ra>
// kernel: tpu_custom_call.1
= control target key start
LH: loop header
LB: loop body
LE: loop exit
PB: predicated region body
PF: predicated region fallthrough
CT: control target
= control target key end

     0   :  { %s1370_s0 = inlined_call_operand.vmem [shape: f32[2,8,32], index: 0, kind: input, shape index: {}]   ;;  %s1371_s1 = inlined_call_operand.vmem [shape: f32[2,8,32], index: 1, kind: input, shape index: {}]   ;;  %s1372_s2 = inlined_call_operand.vmem [shape: f32[8,8], index: 2, kind: input, shape index: {}]   ;;  %s1373_s3 = inlined_call_operand.vmem [shape: bf16[4,32,8], index: 3, kind: input, shape index: {}]   ;;  %s1374_s4 = inlined_call_operand.vmem [shape: f32[4,1,8], index: 4, kind: input, shape index: {}]   ;;  %s1375_s5 = inlined_call_operand.vmem [shape: bf16[4,32,8], index: 5, kind: input, shape index: {}]   ;;  %s1376_s6 = inlined_call_operand.vmem [shape: f32[4,1,8], index: 6, kind: input, shape index: {}]   ;;  %s1377_s7 = inlined_call_operand.vmem [shape: bf16[4,32,8], index: 7, kind: input, shape index: {}]   ;;  %s1378_s8 = inlined_call_operand.vmem [shape: f32[4,1,8], index: 8, kind: input, shape index: {}]   ;;  %s1379_s9 = inlined_call_operand.vmem [shape: bf16[4,8,32], index: 9, kind: input, shape index: {}]   ;;  %s1380_s10 = inlined_call_operand.vmem [shape: f32[1,32], index: 10, kind: input, shape index: {}]   ;;  %s1381_s11 = inlined_call_operand.vmem [shape: f32[1,32], index: 11, kind: input, shape index: {}]   ;;  %s1382_s12 = inlined_call_operand.vmem [shape: f32[1,32], index: 12, kind: input, shape index: {}]   ;;  %s1383_s13 = inlined_call_operand.hbm [shape: f32[2,8,32], index: 13, kind: output, shape index: {}]  }
   0x1   :  { %1388 = sst [smem:[#allocation10_spill]] %s1370_s0 }
   0x2   :  { %1389 = sst [smem:[#allocation11_spill]] %s1371_s1 }
   0x3   :  { %1390 = sst [smem:[#allocation12_spill]] %s1372_s2 }
   0x4   :  { %18 = vsyncpa [#allocation4], 0 }
   0x5   :  { %20 = vsyncpa [#allocation4 + $0x1], 0  ;;  %s1179_s25 = smov 0   ;;  %s1181_s26 = smov 0  }
   0x6   :  { %s1183_s27 = smov 0   ;;  %s1185_s28 = smov 0  }
   0x7   :  { %s1187_s29 = smov 0   ;;  %s1189_s30 = smov 0  }
   0x8 LB: > { %1391 = sst [smem:[#allocation6_spill]] %s1089_s27  ;;  %s883_s14 = sadd.s32 4294967295, %s1101_s30   ;;  %s1101_s30 = sphi %s1189_s30, %s26_s30   ;;  %s1097_s29 = sphi %s1187_s29, %s1406_s29   ;;  %s1093_s28 = sphi %s1185_s28, %s1409_s28   ;;  %s1089_s27 = sphi %s1183_s27, %s1404_s27   ;;  %s1085_s26 = sphi %s1181_s26, %s1408_s26   ;;  %s1081_s25 = sphi %s1179_s25, %s1407_s25  }
   0x9   : > { %1392 = sst [smem:[#allocation7_spill]] %s1097_s29  ;;  %s884_s15 = sadd.s32 4294967294, %s1101_s30  }
   0xa   : > { %s38_s16 = sadd.s32 1, %s1097_s29  ;;  %s337_s17 = sadd.s32 1, %s1089_s27 }
   0xb   : > { %p40_p0 = scmp.ge.s32.totalorder %s38_s16, 2  ;;  %p347_p1 = scmp.ne.s32.totalorder %s1089_s27, %s1085_s26 }
   0xc   : > { %p348_p2 = scmp.eq.s32.totalorder %s883_s14, 1  ;;  %p353_p3 = scmp.ne.s32.totalorder %s1085_s26, %s1081_s25 }
   0xd   : > { %s1411_s16 = smov (%p40_p0, %s38_s16), 0  ;;  %p354_p5 = scmp.eq.s32.totalorder %s884_s15, 1 }
   0xe   : > { %1393 = sst [smem:[#allocation8_spill]] %s1411_s16  ;;  %p1219_p4 = por %p348_p2, %p347_p1 }
   0xf   : > { %s332_s19 = ssub.s32 %s1097_s29, %s1411_s16  ;;  %p888_p6 = scmp.ge.s32.totalorder %s1101_s30, 1 }
  0x10   : > { %p335_p7 = scmp.eq.s32.totalorder %s332_s19, 0  ;;  %p1226_p8 = por %p354_p5, %p353_p3 }
  0x11   : > { %p426_p9 = scmp.lt.s32.totalorder %s1101_s30, 3 }
  0x12   : > { %s1232_s21 = scalar_select %p335_p7, %s1089_s27, %s337_s17  }
  0x13   : > { %p427_p10 = pnand %p888_p6, %p426_p9 }
  0x14   : > { %1396 = sst [smem:[#allocation9_spill]] %s1232_s21  ;;  %s1387_s22 = sand.u32 (!%p427_p10), 1, %s1085_s26  }
  0x15   : > { %430 = sbr.rel (%p427_p10) target bundleno = 1111 (0x457), region = 72  ;;  %p480_p11 = scmp.lt.s32.totalorder (!%p427_p10), %s1093_s28, 1 }
  0x16   : > { %s1397_s2 = sld [smem:[#allocation12_spill]] (!%p427_p10)  ;;  %s1243_s14 = sshll.u32 (!%p427_p10), %s1387_s22, 3 }
  0x17   : > { %s1398_s0 = sld [smem:[#allocation10_spill]] (!%p427_p10)  ;;  %s1260_s22 = smov (!%p427_p10), 0  }
  0x18   : > { %s1399_s1 = sld [smem:[#allocation11_spill]] (!%p427_p10) }
  0x1a   : > { %vm501_vm0 = vcmask 261120   ;;  %v1107_v1 = vmov 0.0   ;;  %s481_s15 = scalar_select %p480_p11, %s1093_s28, 1 }
  0x1b   : > { %502 = vst.msk [vmem:[#allocation2] sm:$0xff] %vm501_vm0, %v1107_v1 }
  0x1c   : > { %v1239_v0 = vld [vmem:[%s1397_s2] sm:$0xff]  ;;  %s890_s17 = sshll.u32 %s481_s15, 3 }
  0x1d   : > { %s486_s29 = scalar_lea.vmem %s1398_s0, %s890_s17 }
  0x1e   : > { %s490_s23 = scalar_lea.vmem %s1399_s1, %s890_s17  ;;  %v1253_v2 = vld [vmem:[%s486_s29] sm:$0xff] }
  0x1f   : > { %v498_v3 = vld [vmem:[%s490_s23] sm:$0xff]  ;;  %v497_v4 = vpack.c.bf16 %v1253_v2, %v1253_v2 }
  0x20   : > { %v1257_v5 = vpack.c.bf16 %v498_v3, %v498_v3 }
  0x21 LB: >> { %s1266_s27 = sshll.u32 %s1105_s22, 4  ;;  %s516_s21 = scalar_lea.vmem %s1374_s4, %s1105_s22  ;;  %vm626_vm1 = vcmask 64512   ;;  %vm662_vm2 = vcmask 1043456   ;;  %s1105_s22 = sphi %s1260_s22, %s508_s22  }
  0x22   : >> { %s511_s19 = scalar_lea.vmem %s1373_s3, %s1266_s27  ;;  %s550_s0 = scalar_lea.vmem %s1375_s5, %s1266_s27  ;;  %v1005_v13 = vld [vmem:[%s516_s21] ss:$0 sm:$0xff] }
  0x23   : >> { %v933_v6 = vld [vmem:[%s511_s19 + $0x8] sm:$0xff]  ;;  %v932_v8 = vld [vmem:[%s511_s19] sm:$0xff]  ;;  %s555_s29 = scalar_lea.vmem %s1376_s6, %s1105_s22  ;;  %s589_s2 = scalar_lea.vmem %s1377_s7, %s1266_s27 }
  0x24   : >> { %v936_v7 = vld [vmem:[%s550_s0 + $0x8] sm:$0xff]  ;;  %542 = vmatpush.bf16.msra.mxu0 %v933_v6  ;;  %v935_v9 = vld [vmem:[%s550_s0] sm:$0xff]  ;;  %s594_s21 = scalar_lea.vmem %s1378_s8, %s1105_s22  ;;  %s925_s27 = sshll.u32 %s1105_s22, 2 }
  0x25   : >> { %581 = vmatpush.bf16.msra.mxu1 %v936_v7  ;;  %v1006_v10 = vld [vmem:[%s555_s29] ss:$0 sm:$0xff]  ;;  %v939_v21 = vld [vmem:[%s589_s2 + $0x8] sm:$0xff]  ;;  %s682_s19 = scalar_lea.vmem %s1379_s9, %s925_s27  ;;  %s508_s22 = sadd.s32 1, %s1105_s22  }
  0x26   : >> { %617 = vmatpush.bf16.msra.mxu2 %v939_v21  ;;  %v938_v22 = vld [vmem:[%s589_s2] sm:$0xff]  ;;  %p505_p12 = scmp.ge.s32.totalorder %s508_s22, 4  }
  0x27   : >> { %v1007_v27 = vld [vmem:[%s594_s21] ss:$0 sm:$0xff]  ;;  %v1108_v56 = vmov (%p505_p12), 32.0   ;;  %s928_s22 = sshll.u32 (%p505_p12), %s1093_s28, 3  ;;  %s1400_s28 = scalar_lea.vmem (%p505_p12), [#allocation3], %s1243_s14 }
  0x28   : >> { %543 = vmatpush.bf16.msra.mxu0 %v932_v8  ;;  %v683_v38 = vld [vmem:[%s682_s19] sm:$0xf]  ;;  %s764_s16 = scalar_lea.hbm (%p505_p12), %s1383_s13, %s928_s22  ;;  %s766_s15 = sshll.u32 (%p505_p12), %s1400_s28, 4  ;;  %s767_s15 = int_to_ptr.vmem [resolvable:$true] %s766_s15 }
  0x29   : >> { %582 = vmatpush.bf16.msra.mxu1 %v935_v9  ;;  %v688_v39 = vsel %vm662_vm2, %v683_v38, 0  ;;  %v679_v47 = vld [vmem:[#allocation2] sm:$0xff]  ;;  %s768_s17 = sshll.u32 (%p505_p12), %s764_s16, 4  ;;  %s1401_s19 = smov (%p505_p12), %s1400_s28  ;;  %s769_s17 = int_to_ptr.hbm [resolvable:$true] %s768_s17 }
  0x2a   : >> { %618 = vmatpush.bf16.msra.mxu2 %v938_v22  ;;  %v1012_v52 = vld [vmem:[%s1380_s10] ss:$0 sm:$0xff] (%p505_p12)  ;;  %s1402_s23 = sand.u32 (%p505_p12), 1, %s1085_s26   ;;  %s1033_s22 = sshra.s32 (%p505_p12), %s769_s17, 4  ;;  %s1034_s22 = int_to_ptr.hbm [resolvable:$true] %s1033_s22 }
  0x2b   : >> { %902 = vmatmul.msk.bf16.vlgmr.msra.gmra.mxu0 %vm501_vm0, %v497_v4  ;;  %s753_s29 = scalar_lea.sflag (%p505_p12), [#allocation4], %s1402_s23  ;;  %s1035_s0 = scalar_lea.hbm (%p505_p12), %s1034_s22, 8 }
  0x2c   : >> { %912 = vmatmul.msk.bf16.vlgmr.msra.gmra.mxu1 %vm501_vm0, %v1257_v5  ;;  %p1036_p13 = scmp.ne.s32.totalorder (%p505_p12), %s1034_s22, %s1035_s0  ;;  %s1039_s24 = scalar_lea.hbm (%p505_p12), %s1383_s13, 16 }
  0x2d   : >> { %922 = vmatmul.msk.bf16.vlgmr.msra.gmra.mxu2 %vm501_vm0, %v1257_v5  ;;  %697 = vmatpush.bf16.msrb.mxu1 %v688_v39  ;;  %p1040_p2 = scmp.lt.s32.totalorder (%p505_p12), %s1034_s22, %s1383_s13  ;;  %p1041_p3 = scmp.lt.s32.totalorder (%p505_p12), %s1039_s24, %s1035_s0 }
  0x2e   : > { %p1037_p0 = pnand (%p505_p12), %p1036_p13, %p1219_p4 }
  0x2f   : > { %p1042_p5 = por (%p505_p12), %p1041_p3, %p1040_p2 }
  0x30   : > { %p1038_p1 = pneg (%p505_p12), %p1037_p0 }
  0x32   : > { %p1043_p6 = pnand (%p505_p12), %p1042_p5, %p1038_p1 }
  0xa8   : >> { %v545_v11 = vpop.f32.mrf.mxu0 }
  0xa9   : >> { %v584_v12 = vpop.f32.mrf.mxu1  ;;  %v546_v16 = vadd.f32 %v1005_v13, %v545_v11  ;;  %v1013_v13 = vld [vmem:[%s1381_s11] ss:$0 sm:$0xff] (%p505_p12) }
  0xaa   : >> { %v585_v14 = vadd.f32 %v1006_v10, %v584_v12 }
  0xab   : >> { %v624_v20 = vpack.c.bf16 %v546_v16, %v546_v16  ;;  %v1014_v16 = vld [vmem:[%s1382_s12] ss:$0 sm:$0xff] (%p505_p12) }
  0xac   : >> { %v625_v15 = vpack.c.bf16 %v585_v14, %v585_v14 }
  0xae   : >> { %v631_v17 = vsel %vm626_vm1, %v625_v15, 0 }
  0xaf   : >> { %640 = vmatpush.bf16.xpose.msra.mxu3 %v631_v17 }
  0xb0   : >> { %v547_v18 = vpop.f32.mrf.mxu0  ;;  %v620_v28 = vpop.f32.mrf.mxu2 }
  0xb1   : >> { %v586_v19 = vpop.f32.mrf.mxu1  ;;  %v621_v29 = vadd.f32 %v1007_v27, %v620_v28 }
  0xb3   : >> { %v658_v31 = vpack.c.bf16 %v621_v29, %v621_v29 }
  0xb5   : >> { %v664_v33 = vsel %vm662_vm2, %v658_v31, 0 }
  0xb6   : >> { %923 = vmatmul.msk.bf16.vlgmr.msra.gmra.mxu3 %vm626_vm1, %v624_v20  ;;  %673 = vmatpush.bf16.msrb.mxu0 %v664_v33 }
  0xb8   : >> { %v622_v35 = vpop.f32.mrf.mxu2 }
 0x139   : >> { %v642_v23 = vpop.f32.mrf.mxu3 }
 0x13a   : >> { %v643_v24 = vadd.f32 %v642_v23, %v1239_v0 }
 0x13c   : >> { %v646_v25 = vsel %vm626_vm1, %v643_v24, -inf }
 0x13d   : >> { %647 = vmax.xlane.f32.xlu0 %v646_v25 }
 0x141   : >> { %v644_v26 = vpop.f32.mrf.mxu3 }
 0x1b0   : >> { %v648_v30 = vpop.xlane.xlu0 %647 }
 0x1b1   : >> { %v649_v32 = vsub.f32 %v643_v24, %v648_v30 }
 0x1b3   : >> { %v650_v34 = vmul.f32 1.442695, %v649_v32 }
 0x1b5   : >> { %1008 = vpow2.f32 %v650_v34 }
 0x1bb   : >> { %v1009_v36 = vpop.eup %1008 }
 0x1bc   : >> { %v652_v37 = vsel %vm626_vm1, %v1009_v36, 0.0 }
 0x1bd   : >> { %653 = vadd.xlane.f32.xlu0 %v652_v37 }
 0x230   : >> { %v654_v40 = vpop.xlane.xlu0 %653 }
 0x231   : >> { %1010 = vrcp.f32 %v654_v40 }
 0x232   : > { %1015 = vrcp.f32 (%p505_p12), %v1108_v56 }
 0x237   : >> { %v1011_v41 = vpop.eup %1010 }
 0x238   : >> { %v656_v42 = vmul.f32 %v1011_v41, %v1009_v36  ;;  %v1016_v57 = vpop.eup (%p505_p12), %1015 }
 0x239   : > { %v718_v58 = vmul.f32 (%p505_p12), 32.0, %v1016_v57  ;;  %vm722_vm3 = vweird.f32 (%p505_p12), %v1016_v57 }
 0x23a   : >> { %v657_v43 = vpack.c.bf16 %v656_v42, %v656_v42 }
 0x23b   : > { %v719_v59 = vsub.f32 (%p505_p12), 1.0, %v718_v58 }
 0x23c   : >> { %924 = vmatmul.msk.bf16.vlgmr.msrb.gmra.mxu0 %vm626_vm1, %v657_v43 }
 0x23d   : > { %v720_v60 = vmul.f32 (%p505_p12), %v1016_v57, %v719_v59 }
 0x23f   : > { %v721_v61 = vadd.f32 (%p505_p12), %v1016_v57, %v720_v60 }
 0x241   : > { %v723_v62 = vsel (%p505_p12), %vm722_vm3, %v1016_v57, %v721_v61 }
 0x2b9   : >> { %v675_v44 = vpop.f32.mrf.mxu0 }
 0x2ba   : >> { %v680_v45 = vpack.c.bf16 %v675_v44, %v675_v44 }
 0x2bc   : >> { %926 = vmatmul.msk.bf16.vlgmr.msrb.gmra.mxu1 %vm626_vm1, %v680_v45 }
 0x2c1   : >> { %v677_v46 = vpop.f32.mrf.mxu0 }
 0x339   : >> { %v699_v48 = vpop.f32.mrf.mxu1 }
 0x33a   : >> { %v703_v49 = vadd.f32 %v699_v48, %v679_v47 }
 0x33c   : >> { %704 = vst.msk [vmem:[#allocation2] sm:$0xff] %vm501_vm0, %v703_v49 }
 0x33d   : > { %507 = sbr.rel (!%p505_p12) target bundleno = 33 (0x21), region = 127 }
 0x341   : >> { %v701_v50 = vpop.f32.mrf.mxu1 }
 0x343   : > { %v705_v51 = vld [vmem:[#allocation2] sm:$0xff] }
 0x344   : > { %v706_v53 = vadd.f32 %v705_v51, %v1253_v2 }
 0x346   : > { %v711_v54 = vadd.f32 %v1012_v52, %v706_v53 }
 0x348   : > { %v714_v55 = vsel %vm501_vm0, %v711_v54, 0.0 }
 0x349   : > { %715 = vadd.xlane.f32.xlu0 %v714_v55 }
 0x3bc   : > { %v716_v63 = vpop.xlane.xlu0 %715 }
 0x3bd   : > { %v724_v0 = vmul.f32 %v723_v62, %v716_v63 }
 0x3bf   : > { %v725_v1 = vsub.f32 %v711_v54, %v724_v0 }
 0x3c1   : > { %v726_v3 = vmul.f32 %v725_v1, %v725_v1 }
 0x3c3   : > { %v727_v2 = vsel %vm501_vm0, %v726_v3, 0.0 }
 0x3c4   : > { %728 = vadd.xlane.f32.xlu0 %v727_v2 }
 0x437   : > { %v729_v4 = vpop.xlane.xlu0 %728 }
 0x438   : > { %v730_v5 = vmul.f32 %v729_v4, %v723_v62 }
 0x43a   : > { %v731_v6 = vadd.f32 1e-05, %v730_v5 }
 0x43c   : > { %1017 = vrsqrt.f32 %v731_v6  ;;  %vm738_vm5 = vweird.f32 %v731_v6 }
 0x442   : > { %v1018_v7 = vpop.eup %1017 }
 0x443   : > { %v733_v8 = vmul.f32 %v1018_v7, %v731_v6  ;;  %vm739_vm4 = vweird.f32 %v1018_v7 }
 0x444   : > { %vm740_vm6 = vmor %vm738_vm5, %vm739_vm4 }
 0x445   : > { %v734_v9 = vmul.f32 %v1018_v7, %v733_v8 }
 0x447   : > { %v735_v10 = vmul.f32 0.5, %v734_v9 }
 0x449   : > { %v736_v11 = vsub.f32 1.5, %v735_v10 }
 0x44b   : > { %v737_v12 = vmul.f32 %v1018_v7, %v736_v11 }
 0x44d   : > { %v741_v14 = vsel %vm740_vm6, %v1018_v7, %v737_v12 }
 0x44e   : > { %v742_v15 = vmul.f32 %v741_v14, %v725_v1 }
 0x450   : > { %v746_v17 = vmul.f32 %v1013_v13, %v742_v15 }
 0x452   : > { %v750_v18 = vadd.f32 %v1014_v16, %v746_v17 }
 0x454   : > { %751 = vst.msk [vmem:[%s1401_s19] sm:$0xff] %vm501_vm0, %v750_v18 }
 0x455   : > { %1046 = shalt.err (!%p1043_p6)
}
 0x456   : > { %940 = dma.vmem_to_hbm [thread:$0]  (%p1219_p4), %s767_s15, 128, %s769_s17, %s753_s29  }
 0x457 PF: > { %p946_p7 = scmp.ge.s32.totalorder %s1101_s30, 2  ;;  %s780_s14 = sand.u32 1, %s1081_s25  }
 0x458   : > { %s781_s27 = scalar_lea.sflag [#allocation4], %s780_s14 }
 0x459   : > { %p943_p9 = pnand %p946_p7, %p1226_p8 }
 0x45b   : > { %p944_p10 = pneg %p943_p9 }
 0x45d   : > { %1076 = dma.done.wait (%p944_p10), %s781_s27, 128  }
 0x45e   : > { %1078 = vsyncadd (%p944_p10), %s781_s27, 4294967168  ;;  %s26_s30 = sadd.s32 1, %s1101_s30   ;;  %s1403_s28 = sld [smem:[#allocation6_spill]] }
 0x45f   : > { %p23_p11 = scmp.ge.s32.totalorder %s26_s30, 4   ;;  %s1404_s27 = sld [smem:[#allocation9_spill]] }
 0x460   : > { %s1405_s18 = sld [smem:[#allocation7_spill]]  ;;  %s1407_s25 = smov %s1085_s26 }
 0x461   : > { %s1406_s29 = sld [smem:[#allocation8_spill]] }
 0x462   :  { %25 = sbr.rel (!%p23_p11) target bundleno = 8 (0x8), region = 138 }
 0x464   : > { %s1408_s26 = smov %s1403_s28 }
 0x466   : > { %s1409_s28 = smov %s1405_s18 }
 0x467   :  { %787 = vsyncpa [#allocation4], 1 }
 0x468   :  { %789 = vsyncpa [#allocation4 + $0x1], 1 }

</bundles_post_ra>
